<compile_context>
chip_gen: v7x
topology: tpu7x:2x2x1
jax: 0.10.0
libtpu: 0.0.40
codegen_flags: <defaults>
</compile_context>

<pallas_src>
import jax
import jax.numpy as jnp
from jax.experimental import pallas as pl
from jax.experimental.pallas import tpu as pltpu


_DEF_BLOCK_BUDGET = 8 * 1024 * 1024    # soft per-grid-step working-set budget
_MIN_GRID_STEPS = 4                    # target grid steps (megacore/pipelining)
_CHUNK_TARGET_BYTES = 32 * 1024        # per-chunk f32 proj working set
_MAX_CHUNKS = 64                       # bound trace-time unrolling


def _round_up(x, d):
    return (x + d - 1) // d * d


def _lane_chunk(bt, f_rows, n):
    """Static lane-chunk width keeping the per-chunk f32 proj in vregs."""
    c = _CHUNK_TARGET_BYTES // max(1, bt * f_rows * 4)
    c = max(128, (c // 128) * 128)
    c = max(c, _round_up(pl.cdiv(n, _MAX_CHUNKS), 128))
    return min(c, n) if n >= 128 else n


def _vmem_limit(per_step_bytes):
    # Double-buffered inputs+outputs plus headroom; at least the 32 MiB scoped
    # default (also raises the v5e 16 MiB default so bigger blocks compile).
    return int(max(32 * 1024 * 1024, 2 * per_step_bytes + (2 << 20)))


# --------------------------------------------------------------------------
# Kernels
# --------------------------------------------------------------------------

def _make_half_kernel(m, n, chunk):
    """F/2 compute.  Each (F/2, lane-chunk) cos/sin tile is stored twice into
    the (2, bt, F/2, 2n) output block: lanes [c0,c1) and [n+c0, n+c1).  That is
    exactly repeat_interleave(2) on the F axis of the real output."""
    starts = list(range(0, n, chunk))

    def kernel(w_ref, *rest):
        # w_ref    : (m, ft, n)        lane-dense F/2 weight rows
        # rest[:m] : (bt, n)           coordinate planes x[..., k]
        # rest[m]  : (2, bt, ft, 2n)   output block ((2,B,F/2,2N) view)
        x_refs, out_ref = rest[:m], rest[m]
        for c0 in starts:                           # static unroll
            c1 = min(c0 + chunk, n)
            proj = None
            for k in range(m):                      # m is tiny (static unroll)
                wk = w_ref[k, :, c0:c1][None, :, :]      # (1, ft, cw)
                xk = x_refs[k][:, c0:c1][:, None, :]     # (bt, 1, cw)
                term = wk * xk                           # pure VPU
                proj = term if proj is None else proj + term
            cos_h = jnp.cos(proj).astype(out_ref.dtype)
            sin_h = jnp.sin(proj).astype(out_ref.dtype)
            out_ref[0, :, :, c0:c1] = cos_h              # row 2j   (copy 0)
            out_ref[0, :, :, n + c0:n + c1] = cos_h      # row 2j+1 (copy 1)
            out_ref[1, :, :, c0:c1] = sin_h
            out_ref[1, :, :, n + c0:n + c1] = sin_h

    return kernel


def _make_dense_kernel(m, n_t, chunk):
    """Very-large-N fallback: repeat_interleave folded into the weight (F rows),
    cos/sin at full F, N axis tiled.  Proven lowering; only used when a full-N
    lane block cannot fit even with minimal (B, F/2) tiles."""
    starts = list(range(0, n_t, chunk))

    def kernel(w_ref, *rest):
        # w_ref    : (m, F, n_t)   lane-dense, repeat-interleaved weight rows
        # rest[:m] : (bt, n_t)     coordinate planes
        # rest[m]  : (2, bt, F, n_t) output block
        x_refs, out_ref = rest[:m], rest[m]
        for c0 in starts:
            c1 = min(c0 + chunk, n_t)
            proj = None
            for k in range(m):
                wk = w_ref[k, :, c0:c1][None, :, :]      # (1, F, cw)
                xk = x_refs[k][:, c0:c1][:, None, :]     # (bt, 1, cw)
                term = wk * xk
                proj = term if proj is None else proj + term
            out_ref[0, :, :, c0:c1] = jnp.cos(proj).astype(out_ref.dtype)
            out_ref[1, :, :, c0:c1] = jnp.sin(proj).astype(out_ref.dtype)

    return kernel


# --------------------------------------------------------------------------
# Tiling plan
# --------------------------------------------------------------------------

def _batch_tiles(B):
    # (bt, N) coordinate-plane blocks need bt % 8 == 0 or bt == B.
    cands = {B}
    cands.update(range(8, B + 1, 8))
    return sorted(cands, reverse=True)


def _row_tiles(f_half):
    # (ft, lanes) blocks need ft % 8 == 0 or ft == f_half.
    cands = {f_half}
    cands.update(range(8, f_half + 1, 8))
    return sorted(cands, reverse=True)


def _pick_tiles(pairs, bytes_fn, steps_fn, budget):
    feasible = [p for p in pairs if bytes_fn(*p) <= budget]
    if not feasible:
        return None

    def key(p):
        s, b = steps_fn(*p), bytes_fn(*p)
        # Prefer >= _MIN_GRID_STEPS grid steps (v7x megacore + pipelining), but
        # not at the price of sub-256 KiB blocks where step overhead dominates.
        s_eff = min(s, _MIN_GRID_STEPS) if (b >= (256 << 10) or s == 1) else 1
        return (s_eff, b)

    return max(feasible, key=key)


# --------------------------------------------------------------------------
# Wrapper
# --------------------------------------------------------------------------

def learnable_fourier_pe(x, Wr, *, out_dtype=None,
                         block_budget_bytes=_DEF_BLOCK_BUDGET):
    """x: (B, N, m); Wr: (F/2, m) = torch.nn.Linear(m, F/2, bias=False).weight.

    Returns (2, B, F, 1, N), matching the PyTorch forward exactly.  Pass
    out_dtype=jnp.bfloat16 to halve the HBM writeback on store-bound chips if
    the consumer tolerates bf16 (compute/accumulation stays f32).
    """
    B, N, m = x.shape
    f_half, m_w = Wr.shape
    assert m_w == m, (Wr.shape, x.shape)
    F = 2 * f_half
    out_dtype = x.dtype if out_dtype is None else jnp.dtype(out_dtype)
    out_isz = jnp.dtype(out_dtype).itemsize

    # Lane-dense coordinate planes (N on lanes); f32 accumulation.  (Small
    # extra wrapper pass over x; acceptable, see design notes.)
    x_planes = [x[:, :, k].astype(jnp.float32) for k in range(m)]
    wt = jnp.transpose(Wr.astype(jnp.float32))            # (m, F/2)

    b_tiles = _batch_tiles(B)
    f_tiles = _row_tiles(f_half)

    # ---------------- preferred path: F/2 compute, full-N lane block --------
    def half_bytes(bt, ft):
        return (2 * bt * ft * 2 * N * out_isz   # output block ((2,bt,ft,2N))
                + m * bt * N * 4                # coordinate planes
                + m * ft * N * 4)               # lane-dense weight tile

    def half_steps(bt, ft):
        return pl.cdiv(B, bt) * pl.cdiv(f_half, ft)

    pick = _pick_tiles([(bt, ft) for bt in b_tiles for ft in f_tiles],
                       half_bytes, half_steps, block_budget_bytes)
    if pick is not None:
        bt, ft = pick
        w_full = jnp.broadcast_to(wt[:, :, None], (m, f_half, N))   # lane-dense
        chunk = _lane_chunk(bt, ft, N)
        grid = (pl.cdiv(B, bt), pl.cdiv(f_half, ft))
        out = pl.pallas_call(
            _make_half_kernel(m, N, chunk),
            out_shape=jax.ShapeDtypeStruct((2, B, f_half, 2 * N), out_dtype),
            grid_spec=pltpu.PrefetchScalarGridSpec(
                num_scalar_prefetch=0,
                grid=grid,
                in_specs=(
                    [pl.BlockSpec((m, ft, N), lambda bi, fi: (0, fi, 0))]
                    + [pl.BlockSpec((bt, N), lambda bi, fi: (bi, 0))
                       for _ in range(m)]),
                out_specs=pl.BlockSpec((2, bt, ft, 2 * N),
                                       lambda bi, fi: (0, bi, fi, 0)),
            ),
            compiler_params=pltpu.CompilerParams(
                dimension_semantics=("parallel", "parallel"),
                vmem_limit_bytes=_vmem_limit(half_bytes(bt, ft))),
        )(w_full, *x_planes)
        # Free reshape: (2,B,F/2,2N) is the same buffer layout as (2,B,F,1,N).
        return out.reshape(2, B, F, 1, N)

    # ---------------- fallback: tile the N axis (dense-F formulation) -------
    n_cands = [c for c in (2048, 1024, 512, 256, 128) if c <= N] or [N]

    def dense_bytes(bt, nt):
        return (2 * bt * F * nt * out_isz + m * bt * nt * 4 + m * F * nt * 4)

    def dense_steps(bt, nt):
        return pl.cdiv(B, bt) * pl.cdiv(N, nt)

    pick = _pick_tiles([(bt, nt) for bt in b_tiles for nt in n_cands],
                       dense_bytes, dense_steps, block_budget_bytes)
    bt, nt = pick if pick is not None else (min(b_tiles), min(n_cands))

    # repeat_interleave(2) folded into the weight (exact identity: output rows
    # 2j and 2j+1 use the same frequency j), then made lane-dense.
    w_rep = jnp.repeat(wt, 2, axis=1)                       # (m, F)
    w_full = jnp.broadcast_to(w_rep[:, :, None], (m, F, nt))
    chunk = _lane_chunk(bt, F, nt)
    grid = (pl.cdiv(B, bt), pl.cdiv(N, nt))
    out = pl.pallas_call(
        _make_dense_kernel(m, nt, chunk),
        out_shape=jax.ShapeDtypeStruct((2, B, F, N), out_dtype),
        grid_spec=pltpu.PrefetchScalarGridSpec(
            num_scalar_prefetch=0,
            grid=grid,
            in_specs=(
                [pl.BlockSpec((m, F, nt), lambda bi, ni: (0, 0, 0))]
                + [pl.BlockSpec((bt, nt), lambda bi, ni: (bi, ni))
                   for _ in range(m)]),
            out_specs=pl.BlockSpec((2, bt, F, nt),
                                   lambda bi, ni: (0, bi, 0, ni)),
        ),
        compiler_params=pltpu.CompilerParams(
            dimension_semantics=("parallel", "parallel"),
            vmem_limit_bytes=_vmem_limit(dense_bytes(bt, nt))),
    )(w_full, *x_planes)
    return out.reshape(2, B, F, 1, N)


# --------------------------------------------------------------------------
# Reference + self-test
# --------------------------------------------------------------------------

def _reference(x, Wr):
    # Pure-JAX transcription of the PyTorch forward, for verification.
    proj = x @ Wr.T                                        # (B, N, F/2)
    cos, sin = jnp.cos(proj), jnp.sin(proj)
    emb = jnp.stack([cos, sin], 0)[:, :, None, :, :]       # (2, B, 1, N, F/2)
    emb = jnp.repeat(emb, 2, axis=-1)                      # (2, B, 1, N, F)
    return jnp.transpose(emb, (0, 1, 4, 2, 3))             # (2, B, F, 1, N)


if __name__ == "__main__":
    def check(name, B, N, m, dim, out_dtype=None,
              block_budget_bytes=_DEF_BLOCK_BUDGET, atol=1e-5, rtol=1e-5):
        f_half = dim // 2
        key = jax.random.PRNGKey(0)
        k_w, k_x = jax.random.split(key)
        # torch.nn.init.normal_(Wr.weight, std=gamma**-2) with gamma=1.0
        Wr = jax.random.normal(k_w, (f_half, m), dtype=jnp.float32)
        x = jax.random.normal(k_x, (B, N, m), dtype=jnp.float32)
        out = learnable_fourier_pe(x, Wr, out_dtype=out_dtype,
                                   block_budget_bytes=block_budget_bytes)
        out = jax.block_until_ready(out)
        ref = _reference(x, Wr)
        assert out.shape == (2, B, dim, 1, N), (name, out.shape)
        ok = jnp.allclose(out.astype(jnp.float32), ref, atol=atol, rtol=rtol)
        assert bool(ok), f"mismatch vs reference in case '{name}'"

    # 1) module-default small config (m=2 positions, dim=32): F/2 path, 1 block
    check("base", B=2, N=128, m=2, dim=32)
    # 2) multi-step F/2 path (grid over the F/2 axis; exercises tiled weight)
    check("tiled_f", B=2, N=512, m=2, dim=64, block_budget_bytes=200_000)
    # 3) unaligned N (full-N lane block handles it without special casing)
    check("unaligned_n", B=2, N=96, m=2, dim=32)
    # 4) bf16 output (halves HBM writeback on store-bound gens)
    check("bf16_out", B=2, N=128, m=2, dim=32, out_dtype=jnp.bfloat16,
          atol=2e-2, rtol=2e-2)
    # 5) dense-F large-N fallback path (forced with a tiny block budget)
    check("dense_fallback", B=2, N=256, m=2, dim=32, block_budget_bytes=60_000)

    print("KERNEL_OK")
</pallas_src>

<mosaic_0001>
module attributes {stable_mosaic.version = 11 : i64} {
  func.func @kernel(%arg0: i32, %arg1: i32, %arg2: memref<2x16x128xf32, #tpu.memory_space<vmem>>, %arg3: memref<2x128xf32, #tpu.memory_space<vmem>>, %arg4: memref<2x128xf32, #tpu.memory_space<vmem>>, %arg5: memref<2x2x16x256xf32, #tpu.memory_space<vmem>>) attributes {dimension_semantics = [#tpu.dimension_semantics<parallel>, #tpu.dimension_semantics<parallel>], iteration_bounds = array<i64: 1, 1>, scalar_prefetch = 0 : i64, scratch_operands = 0 : i64, tpu.core_type = #tpu.core_type<tc>, window_params = [{transform_indices = @transform_0, window_bounds = array<i64: 2, 16, 128>}, {transform_indices = @transform_1, window_bounds = array<i64: 2, 128>}, {transform_indices = @transform_2, window_bounds = array<i64: 2, 128>}, {transform_indices = @transform_3, window_bounds = array<i64: 2, 2, 16, 256>}]} {
    %c0 = arith.constant 0 : index
    %c0_0 = arith.constant 0 : index
    %c0_1 = arith.constant 0 : index
    %0 = vector.load %arg2[%c0, %c0_0, %c0_1] : memref<2x16x128xf32, #tpu.memory_space<vmem>>, vector<1x16x128xf32>
    %1 = vector.shape_cast %0 : vector<1x16x128xf32> to vector<16x128xf32>
    %2 = vector.shape_cast %1 : vector<16x128xf32> to vector<1x16x128xf32>
    %c0_2 = arith.constant 0 : index
    %c0_3 = arith.constant 0 : index
    %3 = vector.load %arg3[%c0_2, %c0_3] : memref<2x128xf32, #tpu.memory_space<vmem>>, vector<2x128xf32>
    %4 = vector.shape_cast %3 : vector<2x128xf32> to vector<2x1x128xf32>
    %5 = vector.broadcast %2 : vector<1x16x128xf32> to vector<2x16x128xf32>
    %6 = vector.broadcast %4 : vector<2x1x128xf32> to vector<2x16x128xf32>
    %7 = arith.mulf %5, %6 : vector<2x16x128xf32>
    %c1 = arith.constant 1 : index
    %c0_4 = arith.constant 0 : index
    %c0_5 = arith.constant 0 : index
    %8 = vector.load %arg2[%c1, %c0_4, %c0_5] : memref<2x16x128xf32, #tpu.memory_space<vmem>>, vector<1x16x128xf32>
    %9 = vector.shape_cast %8 : vector<1x16x128xf32> to vector<16x128xf32>
    %10 = vector.shape_cast %9 : vector<16x128xf32> to vector<1x16x128xf32>
    %c0_6 = arith.constant 0 : index
    %c0_7 = arith.constant 0 : index
    %11 = vector.load %arg4[%c0_6, %c0_7] : memref<2x128xf32, #tpu.memory_space<vmem>>, vector<2x128xf32>
    %12 = vector.shape_cast %11 : vector<2x128xf32> to vector<2x1x128xf32>
    %13 = vector.broadcast %10 : vector<1x16x128xf32> to vector<2x16x128xf32>
    %14 = vector.broadcast %12 : vector<2x1x128xf32> to vector<2x16x128xf32>
    %15 = arith.mulf %13, %14 : vector<2x16x128xf32>
    %16 = arith.addf %7, %15 : vector<2x16x128xf32>
    %17 = math.cos %16 : vector<2x16x128xf32>
    %18 = math.sin %16 : vector<2x16x128xf32>
    %c0_8 = arith.constant 0 : index
    %c0_9 = arith.constant 0 : index
    %c0_10 = arith.constant 0 : index
    %c0_11 = arith.constant 0 : index
    %19 = vector.load %arg5[%c0_8, %c0_9, %c0_10, %c0_11] : memref<2x2x16x256xf32, #tpu.memory_space<vmem>>, vector<1x2x16x128xf32>
    %20 = vector.shape_cast %19 : vector<1x2x16x128xf32> to vector<2x16x128xf32>
    %21 = vector.shape_cast %17 : vector<2x16x128xf32> to vector<1x2x16x128xf32>
    tpu.vector_store %arg5[%c0_8, %c0_9, %c0_10, %c0_11], %21 {strides = array<i32>} : memref<2x2x16x256xf32, #tpu.memory_space<vmem>>, vector<1x2x16x128xf32>,
    %c0_12 = arith.constant 0 : index
    %c0_13 = arith.constant 0 : index
    %c0_14 = arith.constant 0 : index
    %c128 = arith.constant 128 : index
    %22 = vector.load %arg5[%c0_12, %c0_13, %c0_14, %c128] : memref<2x2x16x256xf32, #tpu.memory_space<vmem>>, vector<1x2x16x128xf32>
    %23 = vector.shape_cast %22 : vector<1x2x16x128xf32> to vector<2x16x128xf32>
    %24 = vector.shape_cast %17 : vector<2x16x128xf32> to vector<1x2x16x128xf32>
    tpu.vector_store %arg5[%c0_12, %c0_13, %c0_14, %c128], %24 {strides = array<i32>} : memref<2x2x16x256xf32, #tpu.memory_space<vmem>>, vector<1x2x16x128xf32>,
    %c1_15 = arith.constant 1 : index
    %c0_16 = arith.constant 0 : index
    %c0_17 = arith.constant 0 : index
    %c0_18 = arith.constant 0 : index
    %25 = vector.load %arg5[%c1_15, %c0_16, %c0_17, %c0_18] : memref<2x2x16x256xf32, #tpu.memory_space<vmem>>, vector<1x2x16x128xf32>
    %26 = vector.shape_cast %25 : vector<1x2x16x128xf32> to vector<2x16x128xf32>
    %27 = vector.shape_cast %18 : vector<2x16x128xf32> to vector<1x2x16x128xf32>
    tpu.vector_store %arg5[%c1_15, %c0_16, %c0_17, %c0_18], %27 {strides = array<i32>} : memref<2x2x16x256xf32, #tpu.memory_space<vmem>>, vector<1x2x16x128xf32>,
    %c1_19 = arith.constant 1 : index
    %c0_20 = arith.constant 0 : index
    %c0_21 = arith.constant 0 : index
    %c128_22 = arith.constant 128 : index
    %28 = vector.load %arg5[%c1_19, %c0_20, %c0_21, %c128_22] : memref<2x2x16x256xf32, #tpu.memory_space<vmem>>, vector<1x2x16x128xf32>
    %29 = vector.shape_cast %28 : vector<1x2x16x128xf32> to vector<2x16x128xf32>
    %30 = vector.shape_cast %18 : vector<2x16x128xf32> to vector<1x2x16x128xf32>
    tpu.vector_store %arg5[%c1_19, %c0_20, %c0_21, %c128_22], %30 {strides = array<i32>} : memref<2x2x16x256xf32, #tpu.memory_space<vmem>>, vector<1x2x16x128xf32>,
    return
  }
  func.func @transform_0(%arg0: i32, %arg1: i32) -> (i32, i32, i32) {
    %c0_i32 = arith.constant 0 : i32
    %c0_i32_0 = arith.constant 0 : i32
    %c0_i32_1 = arith.constant 0 : i32
    return %c0_i32, %arg1, %c0_i32_0 : i32, i32, i32
  }
  func.func @transform_1(%arg0: i32, %arg1: i32) -> (i32, i32) {
    %c0_i32 = arith.constant 0 : i32
    %c0_i32_0 = arith.constant 0 : i32
    return %arg0, %c0_i32 : i32, i32
  }
  func.func @transform_2(%arg0: i32, %arg1: i32) -> (i32, i32) {
    %c0_i32 = arith.constant 0 : i32
    %c0_i32_0 = arith.constant 0 : i32
    return %arg0, %c0_i32 : i32, i32
  }
  func.func @transform_3(%arg0: i32, %arg1: i32) -> (i32, i32, i32, i32) {
    %c0_i32 = arith.constant 0 : i32
    %c0_i32_0 = arith.constant 0 : i32
    %c0_i32_1 = arith.constant 0 : i32
    return %c0_i32, %arg0, %arg1, %c0_i32_0 : i32, i32, i32, i32
  }
}

</mosaic_0001>

<bundles_post_ra>
// kernel: tpu_custom_call.1
= control target key start
LH: loop header
LB: loop body
LE: loop exit
PB: predicated region body
PF: predicated region fallthrough
CT: control target
= control target key end

     0   :  { %8 = vsyncpa [#allocation3], 0  ;;  %s1487_s0 = inlined_call_operand.hbm [shape: f32[2,16,128], index: 0, kind: input, shape index: {}]   ;;  %s1488_s1 = inlined_call_operand.vmem [shape: f32[2,128], index: 1, kind: input, shape index: {}]   ;;  %s1489_s2 = inlined_call_operand.vmem [shape: f32[2,128], index: 2, kind: input, shape index: {}]   ;;  %s1490_s3 = inlined_call_operand.hbm [shape: f32[2,2,16,256], index: 3, kind: output, shape index: {}]  }
   0x1   :  { %9 = vsyncpa [#allocation4], 0  ;;  %s1103_s12 = smov [#allocation2]   ;;  %s1055_s16 = scalar_lea.hbm %s1487_s0, 512 }
   0x2   :  { %s15_s13 = sshll.u32 %s1103_s12, 4  ;;  %p1056_p0 = scmp.ne.s32.totalorder %s1487_s0, %s1055_s16  ;;  %s16_s13 = int_to_ptr.vmem [resolvable:$true] %s15_s13 }
   0x3   :  { %p1059_p1 = scmp.lt.u32.totalorder %s1055_s16, %s1487_s0 }
   0x5   :  { %p1061_p2 = pnand %p1059_p1, %p1056_p0 }
   0x7   :  { %1064 = shalt.err (!%p1061_p2)
}
   0x8   :  { %s1065_s21 = scalar_lea.vmem %s16_s13, 512  ;;  %p1070_p4 = scmp.lt.s32.totalorder %s16_s13, %s16_s13 }
   0x9   :  { %p1066_p3 = scmp.ne.s32.totalorder %s16_s13, %s1065_s21  ;;  %p1071_p5 = scmp.lt.s32.totalorder %s1065_s21, %s1065_s21 }
   0xb   :  { %p1072_p6 = por %p1071_p5, %p1070_p4 }
   0xd   :  { %p1073_p7 = pnand %p1072_p6, %p1066_p3 }
   0xf   :  { %1076 = shalt.err (!%p1073_p7)
}
  0x10   :  { %s1104_s22 = smov 128   ;;  %s1105_s23 = smov 8  }
  0x11   :  { %21 = dma.hbm_to_vmem [thread:$0]  %s1487_s0, 512, %s16_s13, [#allocation3], %s1104_s22, %s1104_s22, %s1105_s23  }
  0x12   :  { %1099 = dma.done.wait [#allocation3], 512  }
  0x13   :  { %1100 = vsyncadd [#allocation3], 4294966784  ;;  %v44_v0 = vlaneseq  ;;  %v1106_v1 = vmov 1966171168   ;;  %v29_v11 = vld [vmem:[#allocation2] sm:$0xff]  ;;  %v30_v13 = vld [vmem:[#allocation2 + $0x8] sm:$0xff] }
  0x14   :  { %v42_v2 = vunpack.c.l.s4 %v1106_v1  ;;  %v976_v7 = vld.sshfl [vmem:[%s1488_s1] sm:$0x11 pattern:$0x75316420]  ;;  %v70_v16 = vld [vmem:[#allocation2 + $0x10] sm:$0xff]  ;;  %v71_v17 = vld [vmem:[#allocation2 + $0x18] sm:$0xff] }
  0x15   :  { %v45_v3 = vshrl.u32 %v44_v0, 7  ;;  %v977_v9 = vld.sshfl [vmem:[%s1489_s2] sm:$0x11 pattern:$0x75316420]  ;;  %v40_v10 = vcombine.high %v976_v7, %v976_v7  ;;  %s1113_s0 = smov [#allocation5]  }
  0x16   :  { %v43_v4 = vunpack.c.0.s8 %v42_v2  ;;  %v81_v14 = vcombine.high %v977_v9, %v977_v9  ;;  %v1107_v62 = vmov 683565275   ;;  %v1108_v0 = vmov 2475754826   ;;  %s964_s1 = sshll.u32 %s1113_s0, 4  ;;  %s965_s1 = int_to_ptr.vmem [resolvable:$true] %s964_s1 }
  0x17   :  { %v57_v6 = vsub.s32 0, %v45_v3  ;;  %v1109_v2 = vmov 2131351028   ;;  %s1077_s2 = scalar_lea.vmem %s965_s1, 2048  ;;  %p1082_p9 = scmp.lt.s32.totalorder %s965_s1, %s965_s1 }
  0x18   :  { %v46_v5 = vsub.s32 %v43_v4, %v45_v3  ;;  %v1110_v4 = vmov 2102212464   ;;  %p1078_p8 = scmp.ne.s32.totalorder %s965_s1, %s1077_s2  ;;  %p1083_p10 = scmp.lt.s32.totalorder %s1077_s2, %s1077_s2 }
  0x1a   :  { %v47_v8 = vrot.slane %v976_v7, %v46_v5  ;;  %v88_v12 = vrot.slane %v977_v9, %v46_v5  ;;  %v54_v18 = vrot.slane %v40_v10, %v46_v5  ;;  %v95_v20 = vrot.slane %v81_v14, %v46_v5  ;;  %p1084_p11 = por %p1083_p10, %p1082_p9 }
  0x1b   :  { %v1112_v14 = vmov 1326507024  }
  0x1c   :  { %v58_v15 = vrot.slane %v47_v8, %v57_v6  ;;  %v99_v19 = vrot.slane %v88_v12, %v57_v6  ;;  %v62_v23 = vrot.slane %v54_v18, %v57_v6  ;;  %v103_v26 = vrot.slane %v95_v20, %v57_v6  ;;  %p1085_p12 = pnand %p1084_p11, %p1078_p8 }
  0x1d   :  { %v1111_v6 = vmov 920167782  }
  0x1e   :  { %v65_v21 = vmul.f32 %v58_v15, %v29_v11  ;;  %v66_v22 = vmul.f32 %v58_v15, %v30_v13  ;;  %v106_v24 = vmul.f32 %v99_v19, %v70_v16  ;;  %v107_v25 = vmul.f32 %v99_v19, %v71_v17 }
  0x1f   :  { %v67_v29 = vmul.f32 %v62_v23, %v29_v11  ;;  %v108_v30 = vmul.f32 %v103_v26, %v70_v16  ;;  %v68_v43 = vmul.f32 %v62_v23, %v30_v13  ;;  %v109_v44 = vmul.f32 %v103_v26, %v71_v17 }
  0x20   :  { %v1154_v27 = vadd.f32 %v106_v24, %v65_v21  ;;  %v1156_v28 = vadd.f32 %v107_v25, %v66_v22 }
  0x21   :  { %v1162_v36 = vadd.f32 %v108_v30, %v67_v29  ;;  %v1169_v52 = vadd.f32 %v109_v44, %v68_v43 }
  0x22   :  { %v114_v31 = vand.u32 2147483647, %v1154_v27  ;;  %v117_v32 = vand.u32 2139095040, %v1154_v27  ;;  %v217_v33 = vand.u32 2147483647, %v1156_v28  ;;  %v220_v34 = vand.u32 2139095040, %v1156_v28 }
  0x23   :  { %v323_v42 = vand.u32 2139095040, %v1162_v36  ;;  %v320_v56 = vand.u32 2147483647, %v1162_v36 }
  0x24   :  { %v118_v35 = vshrl.u32 %v117_v32, 23  ;;  %v121_v37 = vand.u32 8388607, %v114_v31  ;;  %v221_v38 = vshrl.u32 %v220_v34, 23  ;;  %v224_v39 = vand.u32 8388607, %v217_v33 }
  0x25   :  { %v324_v49 = vshrl.u32 %v323_v42, 23 }
  0x26   :  { %v978_v40 = vadd.s32 4294967169, %v118_v35  ;;  %v982_v41 = vadd.s32 4294967169, %v221_v38  ;;  %v122_v46 = vor.u32 8388608, %v121_v37  ;;  %v225_v47 = vor.u32 8388608, %v224_v39 }
  0x27   :  { %v986_v51 = vadd.s32 4294967169, %v324_v49 }
  0x28   :  { %v124_v45 = vadd.s32 1, %v978_v40  ;;  %v227_v48 = vadd.s32 1, %v982_v41  ;;  %v1172_v57 = vshll.u32 %v122_v46, 8  ;;  %v1176_v60 = vshll.u32 %v225_v47, 8 }
  0x29   :  { %v1183_v8 = vadd.s32 1, %v986_v51 }
  0x2a   :  { %vm125_vm0 = vcmp.gt.s32.totalorder %v124_v45, 0  ;;  %vm228_vm1 = vcmp.gt.s32.totalorder %v227_v48, 0 }
  0x2b   :  { %v126_v50 = vsel %vm125_vm0, %v124_v45, 0  ;;  %v229_v55 = vsel %vm228_vm1, %v227_v48, 0  ;;  %vm331_vm11 = vcmp.gt.s32.totalorder %v1183_v8, 0  ;;  %vm116_vm0 = vcmp.lt.s32.totalorder %v1154_v27, 0 }
  0x2c   :  { %v127_v53 = vshrl.u32 %v126_v50, 5  ;;  %v128_v54 = vand.u32 31, %v126_v50  ;;  %v1174_v58 = vshrl.u32 %v229_v55, 5  ;;  %v231_v59 = vand.u32 31, %v229_v55 }
  0x2e   :  { %v129_v61 = vsub.s32 32, %v128_v54  ;;  %v131_v63 = vshll.u32 %v1107_v62, %v128_v54  ;;  %v134_v1 = vshll.u32 %v1108_v0, %v128_v54  ;;  %v137_v3 = vshll.u32 %v1109_v2, %v128_v54 }
  0x2f   :  { %v140_v5 = vshll.u32 %v1110_v4, %v128_v54  ;;  %v143_v7 = vshll.u32 %v1111_v6, %v128_v54  ;;  %vm146_vm2 = vcmp.lt.s32.totalorder %v127_v53, 1  ;;  %vm147_vm3 = vcmp.lt.s32.totalorder %v127_v53, 2 }
  0x30   :  { %v130_v9 = vshrl.u32 %v1107_v62, %v129_v61  ;;  %v132_v10 = vshrl.u32 %v1108_v0, %v129_v61  ;;  %v135_v11 = vshrl.u32 %v1109_v2, %v129_v61  ;;  %v138_v12 = vshrl.u32 %v1110_v4, %v129_v61 }
  0x31   :  { %v141_v13 = vshrl.u32 %v1111_v6, %v129_v61  ;;  %v144_v15 = vshrl.u32 %v1112_v14, %v129_v61  ;;  %vm149_vm4 = vcmp.lt.s32.totalorder %v127_v53, 4  ;;  %v232_v19 = vsub.s32 32, %v231_v59 }
  0x32   :  { %v133_v16 = vor.u32 %v132_v10, %v131_v63  ;;  %v136_v17 = vor.u32 %v135_v11, %v134_v1  ;;  %v139_v18 = vor.u32 %v138_v12, %v137_v3  ;;  %vm148_vm5 = vcmp.lt.s32.totalorder %v127_v53, 3 }
  0x33   :  { %v142_v20 = vor.u32 %v141_v13, %v140_v5  ;;  %v145_v21 = vor.u32 %v144_v15, %v143_v7  ;;  %v234_v22 = vshll.u32 %v1107_v62, %v231_v59  ;;  %v237_v34 = vshll.u32 %v1108_v0, %v231_v59 }
  0x34   :  { %v150_v23 = vsel %vm146_vm2, %v130_v9, %v133_v16  ;;  %v151_v24 = vsel %vm149_vm4, %v139_v18, 2102212464  ;;  %v154_v25 = vsel %vm146_vm2, %v133_v16, %v136_v17  ;;  %v158_v26 = vsel %vm146_vm2, %v136_v17, %v139_v18 }
  0x35   :  { %v152_v29 = vsel %vm148_vm5, %v136_v17, %v151_v24  ;;  %v155_v30 = vsel %vm149_vm4, %v142_v20, 920167782  ;;  %v159_v32 = vsel %vm149_vm4, %v145_v21, 1326507024  ;;  %v233_v38 = vshrl.u32 %v1107_v62, %v232_v19 }
  0x36   :  { %v156_v35 = vsel %vm148_vm5, %v139_v18, %v155_v30  ;;  %v160_v37 = vsel %vm148_vm5, %v142_v20, %v159_v32  ;;  %v235_v39 = vshrl.u32 %v1108_v0, %v232_v19  ;;  %v153_v40 = vsel %vm147_vm3, %v150_v23, %v152_v29 }
  0x37   :  { %v157_v41 = vsel %vm147_vm3, %v154_v25, %v156_v35  ;;  %v161_v42 = vsel %vm147_vm3, %v158_v26, %v160_v37  ;;  %v238_v43 = vshrl.u32 %v1109_v2, %v232_v19  ;;  %v240_v50 = vshll.u32 %v1109_v2, %v231_v59 }
  0x38   :  { %v1203_v44 = vmul.u32.u64.low %v1172_v57, %v161_v42  ;;  %v1204_v45 = vmul.u32.u64.high %v1172_v57, %v161_v42, %v1203_v44  ;;  %v1207_v46 = vmul.u32.u64.low %v1172_v57, %v157_v41  ;;  %v1208_v47 = vmul.u32.u64.high %v1172_v57, %v157_v41, %v1207_v46 }
  0x39   :  { %v236_v48 = vor.u32 %v235_v39, %v234_v22  ;;  %v239_v49 = vor.u32 %v238_v43, %v237_v34  ;;  %v241_v51 = vshrl.u32 %v1110_v4, %v232_v19  ;;  %v243_v53 = vshll.u32 %v1110_v4, %v231_v59 }
  0x3a   :  { %v244_v54 = vshrl.u32 %v1111_v6, %v232_v19  ;;  %v246_v55 = vshll.u32 %v1111_v6, %v231_v59  ;;  %v247_v61 = vshrl.u32 %v1112_v14, %v232_v19  ;;  %v169_v63 = vmul.u32 %v1172_v57, %v153_v40 }
  0x3b   :  { %v242_v1 = vor.u32 %v241_v51, %v240_v50  ;;  %vm249_vm6 = vcmp.lt.s32.totalorder %v1174_v58, 1  ;;  %vm250_vm7 = vcmp.lt.s32.totalorder %v1174_v58, 2  ;;  %vm171_vm8 = vc.u32 %v1204_v45, %v1207_v46 }
  0x3c   :  { %v172_v3 = vadd.s32 1, %v1208_v47  ;;  %v245_v5 = vor.u32 %v244_v54, %v243_v53  ;;  %vm251_vm9 = vcmp.lt.s32.totalorder %v1174_v58, 3  ;;  %v248_v7 = vor.u32 %v247_v61, %v246_v55 }
  0x3d   :  { %vm252_vm10 = vcmp.lt.s32.totalorder %v1174_v58, 4  ;;  %v253_v59 = vsel %vm249_vm6, %v233_v38, %v236_v48  ;;  %v257_v9 = vsel %vm249_vm6, %v236_v48, %v239_v49  ;;  %v261_v12 = vsel %vm249_vm6, %v239_v49, %v242_v1 }
  0x3e   :  { %v173_v57 = vsel %vm171_vm8, %v172_v3, %v1208_v47  ;;  %v254_v10 = vsel %vm252_vm10, %v242_v1, 2102212464  ;;  %v258_v11 = vsel %vm252_vm10, %v245_v5, 920167782  ;;  %v262_v17 = vsel %vm252_vm10, %v248_v7, 1326507024 }
  0x3f   :  { %v174_v13 = vadd.s32 %v173_v57, %v169_v63  ;;  %v255_v15 = vsel %vm251_vm9, %v239_v49, %v254_v10  ;;  %v259_v16 = vsel %vm251_vm9, %v242_v1, %v258_v11  ;;  %v263_v20 = vsel %vm251_vm9, %v245_v5, %v262_v17 }
  0x40   :  { %v256_v18 = vsel %vm250_vm7, %v253_v59, %v255_v15  ;;  %v260_v19 = vsel %vm250_vm7, %v257_v9, %v259_v16  ;;  %v264_v22 = vsel %vm250_vm7, %v261_v12, %v263_v20  ;;  %v327_v29 = vand.u32 8388607, %v320_v56 }
  0x41   :  { %v175_v21 = vadd.s32 536870912, %v174_v13  ;;  %v1234_v23 = vmul.u32.u64.low %v1176_v60, %v260_v19  ;;  %v1235_v24 = vmul.u32.u64.high %v1176_v60, %v260_v19, %v1234_v23  ;;  %v332_v30 = vsel %vm331_vm11, %v1183_v8, 0 }
  0x42   :  { %v1239_v25 = vmul.u32.u64.low %v1176_v60, %v264_v22  ;;  %v1240_v26 = vmul.u32.u64.high %v1176_v60, %v264_v22, %v1239_v25  ;;  %v334_v34 = vand.u32 31, %v332_v30  ;;  %v272_v58 = vmul.u32 %v1176_v60, %v256_v18 }
  0x43   :  { %v1245_v32 = vshrl.u32 %v175_v21, 30  ;;  %v426_v35 = vand.u32 2139095040, %v1169_v52  ;;  %v275_v38 = vadd.s32 1, %v1235_v24  ;;  %v328_v40 = vor.u32 8388608, %v327_v29 }
  0x44   :  { %v335_v39 = vsub.s32 32, %v334_v34  ;;  %vm274_vm12 = vc.u32 %v1240_v26, %v1234_v23  ;;  %v337_v43 = vshll.u32 %v1107_v62, %v334_v34  ;;  %v423_v60 = vand.u32 2147483647, %v1169_v52 }
  0x45   :  { %v177_v37 = vshll.u32 %v1245_v32, 30  ;;  %v276_v8 = vsel %vm274_vm12, %v275_v38, %v1235_v24  ;;  %v427_v44 = vshrl.u32 %v426_v35, 23  ;;  %v340_v49 = vshll.u32 %v1108_v0, %v334_v34 }
  0x46   :  { %v277_v42 = vadd.s32 %v276_v8, %v272_v58  ;;  %v338_v48 = vshrl.u32 %v1108_v0, %v335_v39  ;;  %v341_v50 = vshrl.u32 %v1109_v2, %v335_v39  ;;  %v346_v53 = vshll.u32 %v1110_v4, %v334_v34 }
  0x47   :  { %v1253_v41 = vsub.s32 %v174_v13, %v177_v37  ;;  %v1263_v54 = vshll.u32 %v328_v40, 8  ;;  %v333_v61 = vshrl.u32 %v332_v30, 5  ;;  %v343_v63 = vshll.u32 %v1109_v2, %v334_v34 }
  0x48   :  { %v278_v51 = vadd.s32 536870912, %v277_v42  ;;  %v344_v1 = vshrl.u32 %v1110_v4, %v335_v39  ;;  %v170_v3 = vadd.s32 %v1207_v46, %v1204_v45  ;;  %v347_v7 = vshrl.u32 %v1111_v6, %v335_v39 }
  0x49   :  { %v180_v47 = vsub.s32 0, %v1253_v41  ;;  %v990_v59 = vadd.s32 4294967169, %v427_v44  ;;  %v339_v57 = vor.u32 %v338_v48, %v337_v43  ;;  %v342_v10 = vor.u32 %v341_v50, %v340_v49 }
  0x4a   :  { %v1270_v5 = vshrl.u32 %v278_v51, 30  ;;  %v1275_v11 = vand.u32 8388607, %v423_v60  ;;  %v348_v13 = vor.u32 %v347_v7, %v346_v53  ;;  %v349_v15 = vshll.u32 %v1111_v6, %v334_v34 }
  0x4b   :  { %v979_v55 = vmin.u32 %v180_v47, %v1253_v41  ;;  %v350_v16 = vshrl.u32 %v1112_v14, %v335_v39  ;;  %v345_v46 = vor.u32 %v344_v1, %v343_v63  ;;  %vm352_vm13 = vcmp.lt.s32.totalorder %v333_v61, 1 }
  0x4c   :  { %v280_v12 = vshll.u32 %v1270_v5, 30  ;;  %vm355_vm14 = vcmp.lt.s32.totalorder %v333_v61, 4  ;;  %v200_v17 = vsub.s32 4, %v1245_v32  ;;  %v336_v19 = vshrl.u32 %v1107_v62, %v335_v39 }
  0x4d   :  { %v182_v9 = vclz %v979_v55  ;;  %vm354_vm15 = vcmp.lt.s32.totalorder %v333_v61, 3  ;;  %vm353_vm2 = vcmp.lt.s32.totalorder %v333_v61, 2  ;;  %v357_v20 = vsel %vm355_vm14, %v345_v46, 2102212464 }
  0x4e   :  { %v1281_v18 = vsub.s32 %v277_v42, %v280_v12  ;;  %v361_v21 = vsel %vm355_vm14, %v348_v13, 920167782  ;;  %v351_v25 = vor.u32 %v350_v16, %v349_v15  ;;  %v360_v29 = vsel %vm352_vm13, %v339_v57, %v342_v10 }
  0x4f   :  { %v980_v45 = vadd.s32 4294967294, %v182_v9  ;;  %vm219_vm3 = vcmp.lt.s32.totalorder %v1156_v28, 0  ;;  %v362_v35 = vsel %vm354_vm15, %v345_v46, %v361_v21  ;;  %vm1294_vm4 = vcmp.le.f32.partialorder %v114_v31, 0.7853982 }
  0x50   :  { %v283_v24 = vsub.s32 0, %v1281_v18  ;;  %v273_v38 = vadd.s32 %v1234_v23, %v1240_v26  ;;  %v356_v40 = vsel %vm352_vm13, %v336_v19, %v339_v57  ;;  %v363_v43 = vsel %vm353_vm2, %v360_v29, %v362_v35 }
  0x51   :  { %vm981_vm1 = vcmp.lt.s32.totalorder %v980_v45, 0  ;;  %v364_v44 = vsel %vm352_vm13, %v342_v10, %v345_v46  ;;  %vm1307_vm5 = vcmp.le.f32.partialorder %v217_v33, 0.7853982  ;;  %v365_v23 = vsel %vm355_vm14, %v351_v25, 1326507024 }
  0x52   :  { %v185_v22 = vsel %vm981_vm1, 0, %v980_v45  ;;  %v983_v39 = vmin.u32 %v283_v24, %v1281_v18  ;;  %v1313_v26 = vmul.u32.u64.low %v1263_v54, %v363_v43  ;;  %v1314_v48 = vmul.u32.u64.high %v1263_v54, %v363_v43, %v1313_v26 }
  0x53   :  { %v186_v30 = vsub.s32 32, %v185_v22  ;;  %v187_v34 = vshll.u32 %v1253_v41, %v185_v22  ;;  %v190_v58 = vsub.s32 4294967266, %v185_v22  ;;  %v358_v41 = vsel %vm354_vm15, %v342_v10, %v357_v20 }
  0x54   :  { %v285_v47 = vclz %v983_v39  ;;  %v303_v51 = vsub.s32 4, %v1270_v5  ;;  %v366_v53 = vsel %vm354_vm15, %v348_v13, %v365_v23  ;;  %v359_v33 = vsel %vm353_vm2, %v356_v40, %v358_v41 }
  0x55   :  { %v188_v8 = vshrl.u32 %v170_v3, %v186_v30  ;;  %v191_v42 = vadd.s32 127, %v190_v58  ;;  %v367_v63 = vsel %vm353_vm2, %v364_v44, %v366_v53  ;;  %v433_v1 = vadd.s32 1, %v990_v59 }
  0x56   :  { %v984_v55 = vadd.s32 4294967294, %v285_v47  ;;  %v1322_v9 = vmul.u32.u64.low %v1263_v54, %v367_v63  ;;  %v1323_v57 = vmul.u32.u64.high %v1263_v54, %v367_v63, %v1322_v9  ;;  %v201_v10 = vsel %vm116_vm0, %v200_v17, %v1245_v32 }
  0x57   :  { %v189_v49 = vor.u32 %v188_v8, %v187_v34  ;;  %v192_v50 = vshll.u32 %v191_v42, 23  ;;  %v378_v12 = vadd.s32 1, %v1314_v48  ;;  %vm434_vm7 = vcmp.gt.s32.totalorder %v433_v1, 0 }
  0x58   :  { %vm985_vm6 = vcmp.lt.s32.totalorder %v984_v55, 0  ;;  %v375_v61 = vmul.u32 %v1263_v54, %v359_v33  ;;  %v435_v16 = vsel %vm434_vm7, %v433_v1, 0  ;;  %v304_v19 = vsel %vm219_vm3, %v303_v51, %v1270_v5 }
  0x59   :  { %v193_v3 = vor.u32 4788187, %v192_v50  ;;  %v196_v7 = vcvt.s32.f32 %v189_v49  ;;  %v288_v15 = vsel %vm985_vm6, 0, %v984_v55  ;;  %v203_v32 = vsel %vm1294_vm4, 0, %v201_v10 }
  0x5a   :  { %v289_v59 = vsub.s32 32, %v288_v15  ;;  %v290_v45 = vshll.u32 %v1281_v18, %v288_v15  ;;  %v293_v46 = vsub.s32 4294967266, %v288_v15  ;;  %vm377_vm8 = vc.u32 %v1323_v57, %v1313_v26 }
  0x5b   :  { %v194_v13 = vand.u32 2147483647, %v193_v3  ;;  %v437_v17 = vand.u32 31, %v435_v16  ;;  %v1338_v21 = vand.u32 3, %v203_v32  ;;  %v379_v24 = vsel %vm377_vm8, %v378_v12, %v1314_v48 }
  0x5c   :  { %v291_v54 = vshrl.u32 %v273_v38, %v289_v59  ;;  %v294_v22 = vadd.s32 127, %v293_v46  ;;  %v1343_v25 = vsel %vm1307_vm5, 0, %v304_v19  ;;  %v380_v5 = vadd.s32 %v379_v24, %v375_v61 }
  0x5d   :  { %v197_v20 = vmul.f32 %v196_v7, %v194_v13  ;;  %v438_v29 = vsub.s32 32, %v437_v17  ;;  %v1345_v58 = vshrl.u32 %v435_v16, 5  ;;  %v440_v35 = vshll.u32 %v1107_v62, %v437_v17 }
  0x5e   :  { %v292_v30 = vor.u32 %v291_v54, %v290_v45  ;;  %v295_v34 = vshll.u32 %v294_v22, 23  ;;  %v381_v38 = vadd.s32 536870912, %v380_v5  ;;  %v443_v41 = vshll.u32 %v1108_v0, %v437_v17 }
  0x5f   :  { %v198_v18 = vxor.u32 2147483648, %v197_v20  ;;  %v441_v40 = vshrl.u32 %v1108_v0, %v438_v29  ;;  %v444_v44 = vshrl.u32 %v1109_v2, %v438_v29  ;;  %v446_v23 = vshll.u32 %v1109_v2, %v437_v17 }
  0x60   :  { %v296_v42 = vor.u32 4788187, %v295_v34  ;;  %v299_v43 = vcvt.s32.f32 %v292_v30  ;;  %v1356_v47 = vshrl.u32 %v381_v38, 30  ;;  %v447_v48 = vshrl.u32 %v1110_v4, %v438_v29 }
  0x61   :  { %v199_v39 = vsel %vm116_vm0, %v198_v18, %v197_v20  ;;  %v431_v50 = vor.u32 8388608, %v1275_v11  ;;  %v449_v0 = vshll.u32 %v1110_v4, %v437_v17  ;;  %vm212_vm9 = vcmp.eq.s32.totalorder %v1338_v21, 2 }
  0x62   :  { %v202_v8 = vsel %vm1294_vm4, %v1154_v27, %v199_v39  ;;  %v297_v49 = vand.u32 2147483647, %v296_v42  ;;  %v1364_v37 = vand.u32 3, %v1343_v25  ;;  %v383_v51 = vshll.u32 %v1356_v47, 30 }
  0x63   :  { %1039 = vcosq.f32 %v202_v8  ;;  %v442_v53 = vor.u32 %v441_v40, %v440_v35  ;;  %v450_v55 = vshrl.u32 %v1111_v6, %v438_v29  ;;  %vm209_vm10 = vcmp.eq.s32.totalorder %v1338_v21, 0 }
  0x64   :  { %1041 = vsinq.f32 %v202_v8  ;;  %v300_v2 = vmul.f32 %v299_v43, %v297_v49  ;;  %v445_v33 = vor.u32 %v444_v44, %v443_v41  ;;  %v452_v63 = vshll.u32 %v1111_v6, %v437_v17 }
  0x65   :  { %v453_v11 = vshrl.u32 %v1112_v14, %v438_v29  ;;  %vm208_vm11 = vcmp.lt.s32.totalorder %v1338_v21, 2  ;;  %v1372_v4 = vsub.s32 %v380_v5, %v383_v51  ;;  %v448_v1 = vor.u32 %v447_v48, %v446_v23 }
  0x66   :  { %v451_v3 = vor.u32 %v450_v55, %v449_v0  ;;  %vm455_vm12 = vcmp.lt.s32.totalorder %v1345_v58, 1  ;;  %vm206_vm13 = vweird.f32 %v1154_v27  ;;  %v301_v7 = vxor.u32 2147483648, %v300_v2 }
  0x67   :  { %v439_v9 = vshrl.u32 %v1107_v62, %v438_v29  ;;  %vm458_vm14 = vcmp.lt.s32.totalorder %v1345_v58, 4  ;;  %v1378_v10 = vshll.u32 %v431_v50, 8  ;;  %v386_v6 = vsub.s32 0, %v1372_v4 }
  0x68   :  { %vm456_vm15 = vcmp.lt.s32.totalorder %v1345_v58, 2  ;;  %vm457_vm0 = vcmp.lt.s32.totalorder %v1345_v58, 3  ;;  %v460_v14 = vsel %vm458_vm14, %v448_v1, 2102212464  ;;  %v302_v12 = vsel %vm219_vm3, %v301_v7, %v300_v2 }
  0x69   :  { %v454_v13 = vor.u32 %v453_v11, %v452_v63  ;;  %v463_v62 = vsel %vm455_vm12, %v442_v53, %v445_v33  ;;  %v464_v15 = vsel %vm458_vm14, %v451_v3, 920167782  ;;  %v305_v61 = vsel %vm1307_vm5, %v1156_v28, %v302_v12 }
  0x6a   :  { %v376_v16 = vadd.s32 %v1313_v26, %v1323_v57  ;;  %v987_v59 = vmin.u32 %v386_v6, %v1372_v4  ;;  %v619_v45 = vadd.s32 3, %v203_v32  ;;  %1043 = vcosq.f32 %v305_v61 }
  0x6b   :  { %v459_v46 = vsel %vm455_vm12, %v439_v9, %v442_v53  ;;  %v461_v19 = vsel %vm457_vm0, %v445_v33, %v460_v14  ;;  %v465_v20 = vsel %vm457_vm0, %v448_v1, %v464_v15  ;;  %1045 = vsinq.f32 %v305_v61 }
  0x6c   :  { %v388_v31 = vclz %v987_v59  ;;  %v466_v54 = vsel %vm456_vm15, %v463_v62, %v465_v20  ;;  %v467_v26 = vsel %vm455_vm12, %v445_v33, %v448_v1  ;;  %vm315_vm1 = vcmp.eq.s32.totalorder %v1364_v37, 2 }
  0x6d   :  { %v1040_v17 = vpop.eup %1039  ;;  %v468_v22 = vsel %vm458_vm14, %v454_v13, 1326507024  ;;  %v1411_v24 = vmul.u32.u64.low %v1378_v10, %v466_v54  ;;  %v1412_v18 = vmul.u32.u64.high %v1378_v10, %v466_v54, %v1411_v24  ;;  %vm312_vm2 = vcmp.eq.s32.totalorder %v1364_v37, 0 }
  0x6e   :  { %v1042_v57 = vpop.eup %1041  ;;  %v213_v32 = vxor.u32 2147483648, %v1040_v17  ;;  %v988_v29 = vadd.s32 4294967294, %v388_v31  ;;  %v462_v30 = vsel %vm456_vm15, %v459_v46, %v461_v19  ;;  %v469_v34 = vsel %vm457_vm0, %v451_v3, %v468_v22 }
  0x6f   :  { %v210_v5 = vxor.u32 2147483648, %v1042_v57  ;;  %vm311_vm3 = vcmp.lt.s32.totalorder %v1364_v37, 2  ;;  %v470_v39 = vsel %vm456_vm15, %v467_v26, %v469_v34  ;;  %v620_v38 = vand.u32 3, %v619_v45 }
  0x70   :  { %v214_v35 = vsel %vm212_vm9, %v213_v32, %v1042_v57  ;;  %v723_v40 = vadd.s32 3, %v1343_v25  ;;  %vm309_vm4 = vweird.f32 %v1156_v28  ;;  %vm989_vm5 = vcmp.lt.s32.totalorder %v988_v29, 0 }
  0x71   :  { %v211_v41 = vsel %vm209_vm10, %v1040_v17, %v210_v5  ;;  %v1430_v8 = vmul.u32.u64.low %v1378_v10, %v470_v39  ;;  %v1431_v42 = vmul.u32.u64.high %v1378_v10, %v470_v39, %v1430_v8  ;;  %v391_v44 = vsel %vm989_vm5, 0, %v988_v29 }
  0x72   :  { %v215_v43 = vsel %vm208_vm11, %v211_v41, %v214_v35  ;;  %v478_v58 = vmul.u32 %v1378_v10, %v462_v30  ;;  %v481_v23 = vadd.s32 1, %v1412_v18  ;;  %v392_v48 = vsub.s32 32, %v391_v44 }
  0x73   :  { %v216_v25 = vsel %vm206_vm13, nan, %v215_v43  ;;  %v393_v49 = vshll.u32 %v1372_v4, %v391_v44  ;;  %v396_v50 = vsub.s32 4294967266, %v391_v44  ;;  %v406_v0 = vsub.s32 4, %v1356_v47 }
  0x74   :  { %942 = vst [vmem:[#allocation5] sm:$0xff] %v216_v25  ;;  %946 = vst [vmem:[#allocation5 + $0x8] sm:$0xff] %v216_v25  ;;  %vm622_vm6 = vcmp.eq.s32.totalorder %v620_v38, 0  ;;  %vm625_vm7 = vcmp.eq.s32.totalorder %v620_v38, 2  ;;  %v724_v21 = vand.u32 3, %v723_v40  ;;  %v394_v51 = vshrl.u32 %v376_v16, %v392_v48  ;;  %v1044_v55 = vpop.eup %1043 }
  0x75   :  { %v397_v53 = vadd.s32 127, %v396_v50  ;;  %vm480_vm8 = vc.u32 %v1431_v42, %v1411_v24  ;;  %vm621_vm9 = vcmp.lt.s32.totalorder %v620_v38, 2  ;;  %v624_v33 = vsel %vm622_vm6, %v1040_v17, %v210_v5  ;;  %v1046_v11 = vpop.eup %1045 }
  0x76   :  { %v482_v2 = vsel %vm480_vm8, %v481_v23, %v1412_v18  ;;  %v627_v63 = vsel %vm625_vm7, %v213_v32, %v1042_v57  ;;  %vm725_vm10 = vcmp.lt.s32.totalorder %v724_v21, 2  ;;  %v316_v4 = vxor.u32 2147483648, %v1044_v55 }
  0x77   :  { %v395_v1 = vor.u32 %v394_v51, %v393_v49  ;;  %v398_v3 = vshll.u32 %v397_v53, 23  ;;  %v483_v7 = vadd.s32 %v482_v2, %v478_v58  ;;  %v313_v9 = vxor.u32 2147483648, %v1046_v11 }
  0x78   :  { %v628_v10 = vsel %vm621_vm9, %v624_v33, %v627_v63  ;;  %vm726_vm11 = vcmp.eq.s32.totalorder %v724_v21, 0  ;;  %vm729_vm12 = vcmp.eq.s32.totalorder %v724_v21, 2  ;;  %v317_v6 = vsel %vm315_vm1, %v316_v4, %v1046_v11 }
  0x79   :  { %v399_v14 = vor.u32 4788187, %v398_v3  ;;  %v402_v12 = vcvt.s32.f32 %v395_v1  ;;  %v484_v13 = vadd.s32 536870912, %v483_v7  ;;  %v314_v62 = vsel %vm312_vm2, %v1044_v55, %v313_v9 }
  0x7a   :  { %v629_v15 = vsel %vm206_vm13, nan, %v628_v10  ;;  %v728_v61 = vsel %vm726_vm11, %v1044_v55, %v313_v9  ;;  %v731_v16 = vsel %vm729_vm12, %v316_v4, %v1046_v11  ;;  %v318_v59 = vsel %vm311_vm3, %v314_v62, %v317_v6 }
  0x7b   :  { %v400_v45 = vand.u32 2147483647, %v399_v14  ;;  %v1452_v46 = vshrl.u32 %v484_v13, 30  ;;  %951 = vst [vmem:[#allocation5 + $0x40] sm:$0xff] %v629_v15  ;;  %955 = vst [vmem:[#allocation5 + $0x48] sm:$0xff] %v629_v15  ;;  %v732_v19 = vsel %vm725_vm10, %v728_v61, %v731_v16  ;;  %v319_v20 = vsel %vm309_vm4, nan, %v318_v59 }
  0x7c   :  { %v733_v17 = vsel %vm309_vm4, nan, %v732_v19  ;;  %943 = vst [vmem:[#allocation5 + $0x10] sm:$0xff] %v319_v20  ;;  %947 = vst [vmem:[#allocation5 + $0x18] sm:$0xff] %v319_v20  ;;  %vm322_vm13 = vcmp.lt.s32.totalorder %v1162_v36, 0  ;;  %vm321_vm14 = vcmp.le.f32.partialorder %v320_v56, 0.7853982  ;;  %v479_v35 = vadd.s32 %v1411_v24, %v1431_v42 }
  0x7d   :  { %v403_v27 = vmul.f32 %v402_v12, %v400_v45  ;;  %v486_v31 = vshll.u32 %v1452_v46, 30  ;;  %952 = vst [vmem:[#allocation5 + $0x50] sm:$0xff] %v733_v17  ;;  %956 = vst [vmem:[#allocation5 + $0x58] sm:$0xff] %v733_v17  ;;  %v407_v54 = vsel %vm322_vm13, %v406_v0, %v1356_v47  ;;  %vm412_vm6 = vweird.f32 %v1162_v36 }
  0x7e   :  { %v409_v22 = vsel %vm321_vm14, 0, %v407_v54  ;;  %v509_v33 = vsub.s32 4, %v1452_v46  ;;  %vm425_vm7 = vcmp.lt.s32.totalorder %v1169_v52, 0  ;;  %vm424_vm8 = vcmp.le.f32.partialorder %v423_v60, 0.7853982 }
  0x7f   :  { %v404_v37 = vxor.u32 2147483648, %v403_v27  ;;  %v487_v26 = vsub.s32 %v483_v7, %v486_v31  ;;  %v827_v29 = vadd.s32 3, %v409_v22  ;;  %v413_v34 = vand.u32 3, %v409_v22 }
  0x80   :  { %v510_v4 = vsel %vm425_vm7, %v509_v33, %v1452_v46 }
  0x81   :  { %v405_v57 = vsel %vm322_vm13, %v404_v37, %v403_v27  ;;  %v489_v32 = vsub.s32 0, %v487_v26  ;;  %v828_v56 = vand.u32 3, %v827_v29  ;;  %vm418_vm0 = vcmp.eq.s32.totalorder %v413_v34, 2 }
  0x82   :  { %v408_v28 = vsel %vm321_vm14, %v1162_v36, %v405_v57  ;;  %vm414_vm2 = vcmp.lt.s32.totalorder %v413_v34, 2  ;;  %vm415_vm3 = vcmp.eq.s32.totalorder %v413_v34, 0  ;;  %v512_v7 = vsel %vm424_vm8, 0, %v510_v4 }
  0x83   :  { %1047 = vcosq.f32 %v408_v28  ;;  %v991_v18 = vmin.u32 %v489_v32, %v487_v26  ;;  %vm833_vm1 = vcmp.eq.s32.totalorder %v828_v56, 2  ;;  %vm830_vm4 = vcmp.eq.s32.totalorder %v828_v56, 0 }
  0x84   :  { %1049 = vsinq.f32 %v408_v28  ;;  %vm829_vm5 = vcmp.lt.s32.totalorder %v828_v56, 2  ;;  %v931_v9 = vadd.s32 3, %v512_v7  ;;  %v516_v10 = vand.u32 3, %v512_v7 }
  0x85   :  { %v491_v5 = vclz %v991_v18 }
  0x86   :  { %v932_v6 = vand.u32 3, %v931_v9  ;;  %vm521_vm9 = vcmp.eq.s32.totalorder %v516_v10, 2  ;;  %vm518_vm11 = vcmp.eq.s32.totalorder %v516_v10, 0  ;;  %vm517_vm13 = vcmp.lt.s32.totalorder %v516_v10, 2 }
  0x87   :  { %v992_v30 = vadd.s32 4294967294, %v491_v5 }
  0x88   :  { %vm937_vm10 = vcmp.eq.s32.totalorder %v932_v6, 2  ;;  %vm934_vm12 = vcmp.eq.s32.totalorder %v932_v6, 0  ;;  %vm933_vm14 = vcmp.lt.s32.totalorder %v932_v6, 2 }
  0x89   :  { %vm993_vm15 = vcmp.lt.s32.totalorder %v992_v30, 0 }
  0x8a   :  { %v494_v39 = vsel %vm993_vm15, 0, %v992_v30  ;;  %vm515_vm15 = vweird.f32 %v1169_v52 }
  0x8b   :  { %v495_v47 = vsub.s32 32, %v494_v39  ;;  %v496_v38 = vshll.u32 %v487_v26, %v494_v39  ;;  %v499_v40 = vsub.s32 4294967266, %v494_v39 }
  0x8d   :  { %v1048_v41 = vpop.eup %1047  ;;  %v497_v8 = vshrl.u32 %v479_v35, %v495_v47  ;;  %v500_v43 = vadd.s32 127, %v499_v40 }
  0x8e   :  { %v1050_v44 = vpop.eup %1049  ;;  %v419_v58 = vxor.u32 2147483648, %v1048_v41 }
  0x8f   :  { %v416_v23 = vxor.u32 2147483648, %v1050_v44  ;;  %v498_v25 = vor.u32 %v497_v8, %v496_v38  ;;  %v501_v48 = vshll.u32 %v500_v43, 23 }
  0x90   :  { %v420_v24 = vsel %vm418_vm0, %v419_v58, %v1050_v44  ;;  %v835_v42 = vsel %vm833_vm1, %v419_v58, %v1050_v44 }
  0x91   :  { %v417_v49 = vsel %vm415_vm3, %v1048_v41, %v416_v23  ;;  %v502_v50 = vor.u32 4788187, %v501_v48  ;;  %v505_v0 = vcvt.s32.f32 %v498_v25  ;;  %v832_v21 = vsel %vm830_vm4, %v1048_v41, %v416_v23 }
  0x92   :  { %v421_v51 = vsel %vm414_vm2, %v417_v49, %v420_v24  ;;  %v836_v53 = vsel %vm829_vm5, %v832_v21, %v835_v42 }
  0x93   :  { %v422_v55 = vsel %vm412_vm6, nan, %v421_v51  ;;  %v503_v2 = vand.u32 2147483647, %v502_v50  ;;  %v837_v63 = vsel %vm412_vm6, nan, %v836_v53 }
  0x94   :  { %944 = vst [vmem:[#allocation5 + $0x20] sm:$0xff] %v422_v55  ;;  %948 = vst [vmem:[#allocation5 + $0x28] sm:$0xff] %v422_v55 }
  0x95   :  { %953 = vst [vmem:[#allocation5 + $0x60] sm:$0xff] %v837_v63  ;;  %957 = vst [vmem:[#allocation5 + $0x68] sm:$0xff] %v837_v63  ;;  %v506_v11 = vmul.f32 %v505_v0, %v503_v2 }
  0x97   :  { %v507_v36 = vxor.u32 2147483648, %v506_v11 }
  0x99   :  { %v508_v1 = vsel %vm425_vm7, %v507_v36, %v506_v11 }
  0x9a   :  { %v511_v3 = vsel %vm424_vm8, %v1169_v52, %v508_v1 }
  0x9b   :  { %1051 = vcosq.f32 %v511_v3 }
  0x9c   :  { %1053 = vsinq.f32 %v511_v3 }
  0xa5   :  { %v1052_v14 = vpop.eup %1051 }
  0xa6   :  { %v1054_v12 = vpop.eup %1053  ;;  %v522_v13 = vxor.u32 2147483648, %v1052_v14 }
  0xa7   :  { %v519_v60 = vxor.u32 2147483648, %v1054_v12 }
  0xa8   :  { %v523_v62 = vsel %vm521_vm9, %v522_v13, %v1054_v12  ;;  %v939_v15 = vsel %vm937_vm10, %v522_v13, %v1054_v12 }
  0xa9   :  { %v520_v61 = vsel %vm518_vm11, %v1052_v14, %v519_v60  ;;  %v936_v16 = vsel %vm934_vm12, %v1052_v14, %v519_v60 }
  0xaa   :  { %v524_v59 = vsel %vm517_vm13, %v520_v61, %v523_v62  ;;  %v940_v45 = vsel %vm933_vm14, %v936_v16, %v939_v15 }
  0xab   :  { %v525_v46 = vsel %vm515_vm15, nan, %v524_v59  ;;  %v941_v19 = vsel %vm515_vm15, nan, %v940_v45 }
  0xac   :  { %945 = vst [vmem:[#allocation5 + $0x30] sm:$0xff] %v525_v46  ;;  %949 = vst [vmem:[#allocation5 + $0x38] sm:$0xff] %v525_v46 }
  0xad   :  { %954 = vst [vmem:[#allocation5 + $0x70] sm:$0xff] %v941_v19  ;;  %958 = vst [vmem:[#allocation5 + $0x78] sm:$0xff] %v941_v19 }
  0xae   :  { %1088 = shalt.err (!%p1085_p12)
}
  0xaf   :  { %s1089_s5 = scalar_lea.hbm %s1490_s3, 2048 }
  0xb0   :  { %p1090_p13 = scmp.ne.s32.totalorder %s1490_s3, %s1089_s5  ;;  %p1093_p0 = scmp.lt.u32.totalorder %s1089_s5, %s1490_s3 }
  0xb2   :  { %p1095_p1 = pnand %p1093_p0, %p1090_p13 }
  0xb4   :  { %1098 = shalt.err (!%p1095_p1)
}
  0xb5   :  { %s1114_s10 = smov 256   ;;  %s1115_s11 = smov 16  }
  0xb6   :  { %970 = dma.vmem_to_hbm [thread:$0]  %s965_s1, 2048, %s1490_s3, [#allocation4], %s1114_s10, %s1114_s10, %s1115_s11  }
  0xb7   :  { %1101 = dma.done.wait [#allocation4], 2048  }
  0xb8   :  { %1102 = vsyncadd [#allocation4], 4294965248 }
  0xb9   :  { %974 = vsyncpa [#allocation3], 1 }
  0xba   :  { %975 = vsyncpa [#allocation4], 1 }

</bundles_post_ra>
